<compile_context>
chip_gen: v5e
topology: v5e:2x2
jax: 0.10.0
libtpu: 0.0.40
codegen_flags: <defaults>
</compile_context>

<pallas_src>
import jax
import jax.numpy as jnp
from jax.experimental import pallas as pl
from jax.experimental.pallas import tpu as pltpu


def _learnedweight_kernel(packed_ref, o_ref):
    # packed_ref: (1, 4) f32 in VMEM -> a single vreg.
    # lanes 0-1: [fsl_weight, da_weight]; lanes 2-3: [fsl_loss, da_loss].
    packed = packed_ref[...]
    w = packed[:, 0:2]
    l = packed[:, 2:4]
    terms = w + jnp.exp(-w) * l            # one vectorized EUP exp, VPU mul/add
    o_ref[...] = jnp.sum(terms, axis=-1, keepdims=True)


def learnedweight_forward(fsl_weight, da_weight, fsl_loss, da_loss):
    """Fused Pallas forward for `learnedweight`.

    fsl_weight, da_weight: learned scalar parameters, shape (1,) (or scalar)
    fsl_loss, da_loss:     scalar loss values (0-d or shape (1,))
    Returns shape (1,) float32, matching the PyTorch broadcast result.
    """
    # Single wrapper-side pack: one (1, 4) f32 tile, one input DMA.
    vals = [jnp.asarray(v, jnp.float32).reshape(()) for v in
            (fsl_weight, da_weight, fsl_loss, da_loss)]
    packed = jnp.stack(vals).reshape(1, 4)

    out = pl.pallas_call(
        _learnedweight_kernel,
        out_shape=jax.ShapeDtypeStruct((1, 1), jnp.float32),
        # Grid-free, fully VMEM-resident: one step, no pipelining.
        in_specs=[pl.BlockSpec(memory_space=pltpu.MemorySpace.VMEM)],
        out_specs=pl.BlockSpec(memory_space=pltpu.MemorySpace.VMEM),
        # Advisory: this custom call is essentially free; don't serialize
        # surrounding work around it.
        cost_estimate=pl.CostEstimate(
            flops=6, transcendentals=2, bytes_accessed=20),
    )(packed)
    return out.reshape(1)


def learnedweight_reference(fsl_weight, da_weight, fsl_loss, da_loss):
    """Pure-JAX reference mirroring the PyTorch forward exactly."""
    fsl_weight = jnp.asarray(fsl_weight, jnp.float32)
    da_weight = jnp.asarray(da_weight, jnp.float32)
    return (fsl_weight + jnp.exp(-1.0 * fsl_weight) * fsl_loss
            + da_weight + jnp.exp(-1.0 * da_weight) * da_loss)


if __name__ == "__main__":
    # Parameters exactly as in __init__: ones(1).
    fsl_weight = jnp.ones((1,), jnp.float32)
    da_weight = jnp.ones((1,), jnp.float32)

    # Deterministic example loss scalars.
    key = jax.random.PRNGKey(0)
    k1, k2 = jax.random.split(key)
    fsl_loss = jnp.abs(jax.random.normal(k1, (), jnp.float32)) + 0.1
    da_loss = jnp.abs(jax.random.normal(k2, (), jnp.float32)) + 0.1

    out = learnedweight_forward(fsl_weight, da_weight, fsl_loss, da_loss)
    out = jax.block_until_ready(out)

    ref = learnedweight_reference(fsl_weight, da_weight, fsl_loss, da_loss)
    ref = jnp.asarray(ref, jnp.float32).reshape(1)

    assert out.shape == (1,)
    assert jnp.allclose(out, ref, atol=1e-6, rtol=1e-6), (out, ref)

    print("KERNEL_OK")
</pallas_src>

<mosaic_0001>
module attributes {stable_mosaic.version = 11 : i64} {
  func.func @_learnedweight_kernel(%arg0: memref<1x4xf32, #tpu.memory_space<vmem>>, %arg1: memref<1x1xf32, #tpu.memory_space<vmem>>) attributes {dimension_semantics = [], scalar_prefetch = 0 : i64, scratch_operands = 0 : i64, tpu.core_type = #tpu.core_type<tc>} {
    %c0 = arith.constant 0 : index
    %c0_0 = arith.constant 0 : index
    %0 = vector.load %arg0[%c0, %c0_0] : memref<1x4xf32, #tpu.memory_space<vmem>>, vector<1x4xf32>
    %1 = vector.extract_strided_slice %0 {offsets = [0, 0], sizes = [1, 2], strides = [1, 1]} : vector<1x4xf32> to vector<1x2xf32>
    %2 = vector.extract_strided_slice %0 {offsets = [0, 2], sizes = [1, 2], strides = [1, 1]} : vector<1x4xf32> to vector<1x2xf32>
    %cst = arith.constant 0.000000e+00 : f32
    %3 = vector.broadcast %cst : f32 to vector<1x2xf32>
    %4 = arith.subf %3, %1 : vector<1x2xf32>
    %5 = math.exp %4 : vector<1x2xf32>
    %6 = arith.mulf %5, %2 : vector<1x2xf32>
    %7 = arith.addf %1, %6 : vector<1x2xf32>
    %cst_1 = arith.constant dense<0.000000e+00> : vector<1xf32>
    %8 = vector.multi_reduction <add>, %7, %cst_1 [1] : vector<1x2xf32> to vector<1xf32>
    %9 = vector.shape_cast %8 : vector<1xf32> to vector<1x1xf32>
    %c0_2 = arith.constant 0 : index
    %c0_3 = arith.constant 0 : index
    %10 = vector.load %arg1[%c0_2, %c0_3] : memref<1x1xf32, #tpu.memory_space<vmem>>, vector<1x1xf32>
    tpu.vector_store %arg1[%c0_2, %c0_3], %9 {strides = array<i32>} : memref<1x1xf32, #tpu.memory_space<vmem>>, vector<1x1xf32>,
    return
  }
}

</mosaic_0001>

<bundles_post_ra>
// kernel: tpu_custom_call.1
= control target key start
LH: loop header
LB: loop body
LE: loop exit
PB: predicated region body
PF: predicated region fallthrough
CT: control target
= control target key end

     0   :  { %6 = vsyncpa [#allocation3], 0  ;;  %s132_s0 = inlined_call_operand.hbm [shape: f32[1,4], index: 0, kind: input, shape index: {}]   ;;  %s133_s1 = inlined_call_operand.hbm [shape: f32[1,1], index: 1, kind: output, shape index: {}]  }
   0x1   :  { %7 = vsyncpa [#allocation4], 0  ;;  %s13_s8 = sshll.u32 %s132_s0, 4  ;;  %s113_s9 = smov [#allocation2]   ;;  %s14_s8 = int_to_ptr.hbm [resolvable:$true] %s13_s8 }
   0x2   :  { %s15_s10 = sshll.u32 %s113_s9, 4  ;;  %s16_s10 = int_to_ptr.vmem [resolvable:$true] %s15_s10 }
   0x3   :  { %18 = dma.hbm_to_vmem [thread:$0]  %s14_s8, 16, %s16_s10, [#allocation3]  }
   0x4   :  { %109 = dma.done.wait [#allocation3], 16  }
   0x5   :  { %110 = vsyncadd [#allocation3], 4294967280  ;;  %v23_v0 = vld [vmem:[#allocation2] sm:$0x1]  ;;  %s114_s11 = smov 126   ;;  %vm33_vm0 = vcmask 8192  }
   0x6   :  { %28 = vrot.lane.b32.xlu0 %v23_v0, %s114_s11  ;;  %v24_v1 = vsub.f32 0.0, %v23_v0  ;;  %s115_s0 = smov [#allocation5]   ;;  %s46_s15 = sshll.u32 %s133_s1, 4  ;;  %vm37_vm1 = vcmask 0   ;;  %s47_s15 = int_to_ptr.hbm [resolvable:$true] %s46_s15 }
   0x7   :  { %s44_s12 = sshll.u32 %s115_s0, 4  ;;  %s45_s12 = int_to_ptr.vmem [resolvable:$true] %s44_s12 }
   0x8   :  { %v25_v2 = vmul.f32 1.442695, %v24_v1 }
   0xa   :  { %59 = vpow2.f32 %v25_v2 }
  0x10   :  { %v60_v3 = vpop.eup %59 }
  0x78   :  { %v29_v4 = vpop.permute.xlu0 %28 }
  0x79   :  { %v31_v5 = vmul.f32 %v60_v3, %v29_v4 }
  0x7b   :  { %v32_v6 = vadd.f32 %v31_v5, %v23_v0 }
  0x7d   :  { %v34_v7 = vsel %vm33_vm0, %v32_v6, 0.0 }
  0x7e   :  { %35 = vadd.xlane.f32.xlu0 %v34_v7 }
  0xf1   :  { %v36_v8 = vpop.xlane.xlu0 %35 }
  0xf2   :  { %38 = vst.msk [vmem:[#allocation5] sm:$0x1] %vm37_vm1, %v36_v8 }
  0xf3   :  { %49 = dma.vmem_to_hbm [thread:$0]  %s45_s12, 16, %s47_s15, [#allocation4]  }
  0xf4   :  { %111 = dma.done.wait [#allocation4], 16  }
  0xf5   :  { %112 = vsyncadd [#allocation4], 4294967280 }
  0xf6   :  { %54 = vsyncpa [#allocation3], 1 }
  0xf7   :  { %55 = vsyncpa [#allocation4], 1 }

</bundles_post_ra>
